<compile_context>
chip_gen: v7x
topology: tpu7x:2x2x1
jax: 0.10.0
libtpu: 0.0.40
codegen_flags: <defaults>
</compile_context>

<pallas_src>
import math
from functools import partial

import jax
import jax.numpy as jnp
from jax.experimental import pallas as pl
from jax.experimental.pallas import tpu as pltpu

MASK_VALUE = -1e30  # large finite negative (avoids exp(-inf - -inf) NaN hazards)


# --------------------------------------------------------------------------- #
# RoPE helper (interleaved pairs), sign/parity pre-folded into the sin tables  #
# --------------------------------------------------------------------------- #
def _rope(z, cos, sin_a, sin_b):
    """out[2i] = z[2i]*c - z[2i+1]*s ; out[2i+1] = z[2i+1]*c + z[2i]*s.

    sin_a has -sin on even lanes / 0 on odd; sin_b has +sin on odd lanes / 0 on
    even, so this is two static lane rolls + 3 FMAs.  The rolled-in wrap lanes
    are multiplied by 0, so the wrap is harmless.
    """
    z_next = jnp.roll(z, shift=-1, axis=-1)   # z[..., j+1] at lane j
    z_prev = jnp.roll(z, shift=1, axis=-1)    # z[..., j-1] at lane j
    return z * cos + z_next * sin_a + z_prev * sin_b


# --------------------------------------------------------------------------- #
# Kernel 1: fused QKV projection + RoPE + head split                           #
# --------------------------------------------------------------------------- #
def qkv_rope_kernel(x_ref, wqkv_ref, bqkv_ref, cos_ref, sa_ref, sb_ref,
                    q_ref, k_ref, v_ref, *, n_head, hs):
    C = n_head * hs
    x = x_ref[0]                                                   # (tm, C) bf16
    # Single full-width GEMM on the MXU, f32 accumulation.
    qkv = jnp.dot(x, wqkv_ref[...],
                  preferred_element_type=jnp.float32) + bqkv_ref[...]   # (tm, 3C) f32

    cos, sa, sb = cos_ref[...], sa_ref[...], sb_ref[...]           # (tm, hs) f32

    # Head split happens ONCE per row tile (amortized over all kv steps of the
    # attention kernel), so the per-head lane slices are cheap here.
    # 1/sqrt(hs) is already folded into W_q / b_q on the host.
    for h in range(n_head):
        q_h = qkv[:, h * hs:(h + 1) * hs]
        k_h = qkv[:, C + h * hs:C + (h + 1) * hs]
        v_h = qkv[:, 2 * C + h * hs:2 * C + (h + 1) * hs]
        q_ref[0, h] = _rope(q_h, cos, sa, sb).astype(q_ref.dtype)  # f32 RoPE -> bf16
        k_ref[0, h] = _rope(k_h, cos, sa, sb).astype(k_ref.dtype)
        v_ref[0, h] = v_h.astype(v_ref.dtype)


# --------------------------------------------------------------------------- #
# Kernel 2: flash attention + output projection                                #
# --------------------------------------------------------------------------- #
def flash_attn_proj_kernel(q_ref, k_ref, v_ref, wproj_ref, bproj_ref, o_ref,
                           m_acc, l_acc, o_acc, *, tq, tk, exp_in_bf16):
    qi = pl.program_id(1)
    ki = pl.program_id(2)
    nk = pl.num_programs(2)

    @pl.when(ki == 0)
    def _init():
        m_acc[...] = jnp.full_like(m_acc, MASK_VALUE)
        l_acc[...] = jnp.zeros_like(l_acc)
        o_acc[...] = jnp.zeros_like(o_acc)

    # Causal tile skipping: only run when this kv tile has >=1 allowed column.
    # (The kv-side BlockSpec index is clamped in the wrapper, so skipped steps
    # revisit the previous block and the DMA is elided.)
    @pl.when(ki * tk < (qi + 1) * tq)
    def _kv_step():
        q = q_ref[0]                                               # (H, tq, hs) bf16 (scale pre-folded)
        k = k_ref[0]                                               # (H, tk, hs) bf16
        v = v_ref[0]                                               # (H, tk, hs) bf16

        # Batched over heads on the MXU, f32 accumulation.
        s = jnp.einsum("hqd,hkd->hqk", q, k,
                       preferred_element_type=jnp.float32)         # (H, tq, tk)

        # Causal bias computed once at (tq, tk) and broadcast over heads.
        rowpos = qi * tq + jax.lax.broadcasted_iota(jnp.int32, (tq, tk), 0)
        colpos = ki * tk + jax.lax.broadcasted_iota(jnp.int32, (tq, tk), 1)
        bias = jnp.where(rowpos >= colpos, 0.0, MASK_VALUE).astype(jnp.float32)
        s = s + bias[None]

        # Online softmax update.
        m_prev = m_acc[...]                                        # (H, tq, 1)
        m_new = jnp.maximum(m_prev, jnp.max(s, axis=-1, keepdims=True))
        alpha = jnp.exp(m_prev - m_new)                            # small, keep f32
        if exp_in_bf16:
            # v6e / v7x: bf16 EUP ~2x exp throughput on the binding EUP slot;
            # p is consumed as bf16 by the PV matmul anyway.
            p = jnp.exp((s - m_new).astype(jnp.bfloat16))          # (H, tq, tk) bf16
            l_new = jnp.sum(p, axis=-1, keepdims=True, dtype=jnp.float32)
        else:
            # v5e and older: no bf16 EUP, keep the exp in f32.
            p32 = jnp.exp(s - m_new)
            l_new = jnp.sum(p32, axis=-1, keepdims=True)
            p = p32.astype(jnp.bfloat16)

        l_acc[...] = alpha * l_acc[...] + l_new
        pv = jnp.einsum("hqk,hkd->hqd", p, v,
                        preferred_element_type=jnp.float32)        # bf16 MXU, f32 acc
        o_acc[...] = alpha * o_acc[...] + pv
        m_acc[...] = m_new

    # Finalize: deferred 1/l, head-concat, then ONE full-width projection.
    @pl.when(ki == nk - 1)
    def _finalize():
        n_head = o_acc.shape[0]
        y = o_acc[...] * pl.reciprocal(l_acc[...], approx=True)    # (H, tq, hs) f32
        # Head concat -> (tq, C) bf16 (cheap lane concat, once per q tile).
        y_cat = jnp.concatenate(
            [y[h].astype(jnp.bfloat16) for h in range(n_head)], axis=-1)
        out = jnp.dot(y_cat, wproj_ref[...],
                      preferred_element_type=jnp.float32) + bproj_ref[...]
        # TODO(synk): attention_dropout / dropout2 treated as 0.0 (eval mode).
        o_ref[0] = out.astype(o_ref.dtype)


# --------------------------------------------------------------------------- #
# Host-side wrapper                                                            #
# --------------------------------------------------------------------------- #
def _device_kind():
    try:
        return jax.devices()[0].device_kind.lower()
    except Exception:  # pragma: no cover
        return ""


def _pick_tile(t, cap):
    for cand in (512, 256, 128):
        if cand <= cap and t % cand == 0:
            return cand
    return t


def causal_self_attention(x, wqkv, bqkv, wproj, bproj, cos_t, sin_a_t, sin_b_t,
                          n_head, tq=None, tk=None):
    """x: (B, T, C) bf16; wqkv: (C, 3C); bqkv: (1, 3C); wproj: (C, C) (in->out);
    bproj: (1, C); cos/sin tables: (T, hs) f32 (shared across heads)."""
    B, T, C = x.shape
    hs = C // n_head
    scale = 1.0 / math.sqrt(hs)

    # Generation-dependent tiling / VMEM budget / exp dtype.
    kind = _device_kind()
    big_vmem = ("v5" in kind) or ("v6" in kind)          # 128 MiB VMEM parts
    tile_cap = 512 if big_vmem else 256                  # v7x-class: cap at 256
    vmem_limit = (100 if big_vmem else 48) * 1024 * 1024
    exp_in_bf16 = ("v6" in kind) or ("v7" in kind) or ("7x" in kind)

    # Fold the 1/sqrt(hs) attention scale into the Q projection weights/bias
    # (RoPE is a rotation, so scaling commutes with it).
    wqkv_f = wqkv.astype(jnp.float32)
    bqkv_f = bqkv.astype(jnp.float32)
    wqkv_s = jnp.concatenate([wqkv_f[:, :C] * scale, wqkv_f[:, C:]], -1).astype(wqkv.dtype)
    bqkv_s = jnp.concatenate([bqkv_f[:, :C] * scale, bqkv_f[:, C:]], -1).astype(bqkv.dtype)

    tm = _pick_tile(T, tile_cap)
    tq = tq or _pick_tile(T, tile_cap)
    tk = tk or _pick_tile(T, tile_cap)
    assert T % tm == 0 and T % tq == 0 and T % tk == 0
    nm, nq, nk = T // tm, T // tq, T // tk

    const1 = pl.Buffered(1)   # single-buffer constant (never re-fetched) blocks

    # ---------------- Kernel 1: QKV projection + RoPE + head split ----------
    qkv_out = jax.ShapeDtypeStruct((B, n_head, T, hs), jnp.bfloat16)
    q, k, v = pl.pallas_call(
        partial(qkv_rope_kernel, n_head=n_head, hs=hs),
        out_shape=(qkv_out, qkv_out, qkv_out),
        grid=(B, nm),
        in_specs=[
            pl.BlockSpec((1, tm, C), lambda b, i: (b, i, 0)),                       # x rows
            pl.BlockSpec((C, 3 * C), lambda b, i: (0, 0), pipeline_mode=const1),    # W_qkv
            pl.BlockSpec((1, 3 * C), lambda b, i: (0, 0), pipeline_mode=const1),    # b_qkv
            pl.BlockSpec((tm, hs), lambda b, i: (i, 0)),                            # cos
            pl.BlockSpec((tm, hs), lambda b, i: (i, 0)),                            # folded sin A
            pl.BlockSpec((tm, hs), lambda b, i: (i, 0)),                            # folded sin B
        ],
        out_specs=(
            pl.BlockSpec((1, n_head, tm, hs), lambda b, i: (b, 0, i, 0)),
            pl.BlockSpec((1, n_head, tm, hs), lambda b, i: (b, 0, i, 0)),
            pl.BlockSpec((1, n_head, tm, hs), lambda b, i: (b, 0, i, 0)),
        ),
        compiler_params=pltpu.CompilerParams(
            dimension_semantics=("parallel", "parallel"),
            vmem_limit_bytes=vmem_limit,
        ),
    )(x, wqkv_s, bqkv_s, cos_t, sin_a_t, sin_b_t)

    # ---------------- Kernel 2: flash attention + c_proj --------------------
    def kv_index(b, qi, ki):
        # Clamp to the last causally-needed kv tile so skipped (upper-triangle)
        # grid steps revisit the resident block and the DMA is elided.
        kmax = ((qi + 1) * tq - 1) // tk
        return (b, 0, jnp.minimum(ki, kmax), 0)

    out = pl.pallas_call(
        partial(flash_attn_proj_kernel, tq=tq, tk=tk, exp_in_bf16=exp_in_bf16),
        out_shape=jax.ShapeDtypeStruct((B, T, C), x.dtype),
        grid=(B, nq, nk),
        in_specs=[
            pl.BlockSpec((1, n_head, tq, hs), lambda b, qi, ki: (b, 0, qi, 0)),     # q
            pl.BlockSpec((1, n_head, tk, hs), kv_index),                            # k
            pl.BlockSpec((1, n_head, tk, hs), kv_index),                            # v
            pl.BlockSpec((C, C), lambda b, qi, ki: (0, 0), pipeline_mode=const1),   # W_proj
            pl.BlockSpec((1, C), lambda b, qi, ki: (0, 0), pipeline_mode=const1),   # b_proj
        ],
        out_specs=pl.BlockSpec((1, tq, C), lambda b, qi, ki: (b, qi, 0)),
        scratch_shapes=[
            pltpu.VMEM((n_head, tq, 1), jnp.float32),    # running max m
            pltpu.VMEM((n_head, tq, 1), jnp.float32),    # running sum l
            pltpu.VMEM((n_head, tq, hs), jnp.float32),   # output accumulator
        ],
        compiler_params=pltpu.CompilerParams(
            dimension_semantics=("parallel", "parallel", "arbitrary"),
            vmem_limit_bytes=vmem_limit,
        ),
    )(q, k, v, wproj, bproj)
    return out


# --------------------------------------------------------------------------- #
# RoPE tables (shared across heads -> (block_size, hs), NOT duplicated to C)   #
# --------------------------------------------------------------------------- #
def precompute_rope(hs, block_size, theta=10000.0):
    """Matches _precompute_freqs_cis.  Returns (cos, sin, sin_a, sin_b), each
    (block_size, hs):
      cos/sin : per-pair values duplicated [c0,c0,c1,c1,...] (sin: reference only)
      sin_a   : -sin on even lanes, 0 on odd  -> multiplies roll(x, -1)
      sin_b   : +sin on odd lanes,  0 on even -> multiplies roll(x, +1)
    """
    freqs = 1.0 / theta ** (jnp.arange(0, hs, 2)[: hs // 2].astype(jnp.float32) / hs)
    t = jnp.arange(block_size, dtype=jnp.float32)
    ang = jnp.outer(t, freqs)                            # (block_size, hs//2)
    cos = jnp.repeat(jnp.cos(ang), 2, axis=-1)           # (block_size, hs)
    sin = jnp.repeat(jnp.sin(ang), 2, axis=-1)
    parity = jnp.arange(hs) % 2
    sin_a = jnp.where(parity == 0, -sin, 0.0)
    sin_b = jnp.where(parity == 1, sin, 0.0)
    return cos, sin, sin_a, sin_b


# --------------------------------------------------------------------------- #
# Pure-JAX reference mirroring the PyTorch forward (eval mode, RoPE=True)      #
# --------------------------------------------------------------------------- #
def reference_jax(x, wqkv, bqkv, wproj, bproj, cos, sin, n_head):
    B, T, C = x.shape
    hs = C // n_head
    xf = x.astype(jnp.float32)
    qkv = xf @ wqkv.astype(jnp.float32) + bqkv.astype(jnp.float32)
    q, k, v = qkv[..., :C], qkv[..., C:2 * C], qkv[..., 2 * C:]

    def heads(z):
        return z.reshape(B, T, n_head, hs).transpose(0, 2, 1, 3)   # (B, H, T, hs)

    q, k, v = heads(q), heads(k), heads(v)
    cos_h = cos[:, 0::2].reshape(1, 1, T, hs // 2)
    sin_h = sin[:, 0::2].reshape(1, 1, T, hs // 2)

    def rope(z):
        zr = z.reshape(B, n_head, T, hs // 2, 2)
        real = zr[..., 0] * cos_h - zr[..., 1] * sin_h
        imag = zr[..., 0] * sin_h + zr[..., 1] * cos_h
        out = jnp.stack([real, imag], axis=-1).reshape(B, n_head, T, hs)
        return out.astype(jnp.bfloat16)

    q, k = rope(q), rope(k)
    v = v.astype(jnp.bfloat16)
    q, k, v = (z.astype(jnp.float32) for z in (q, k, v))
    s = jnp.einsum("bhqd,bhkd->bhqk", q, k) / math.sqrt(hs)
    mask = jnp.tril(jnp.ones((T, T), bool))
    s = jnp.where(mask, s, -jnp.inf)
    w = jax.nn.softmax(s, axis=-1)
    y = jnp.einsum("bhqk,bhkd->bhqd", w, v)
    y = y.transpose(0, 2, 1, 3).reshape(B, T, C)
    out = y @ wproj.astype(jnp.float32) + bproj.astype(jnp.float32)
    return out.astype(x.dtype)


# --------------------------------------------------------------------------- #
# Self-test                                                                    #
# --------------------------------------------------------------------------- #
if __name__ == "__main__":
    def run_case(B, T, C, n_head, block_size, tq=None, tk=None):
        hs = C // n_head
        assert C % n_head == 0 and hs % 2 == 0
        dtype = jnp.bfloat16
        key = jax.random.PRNGKey(0)
        k0, k1, k2, k3, k4 = jax.random.split(key, 5)
        x = jax.random.normal(k0, (B, T, C), jnp.float32).astype(dtype)
        wqkv = (0.02 * jax.random.normal(k1, (C, 3 * C), jnp.float32)).astype(dtype)
        bqkv = (0.02 * jax.random.normal(k2, (1, 3 * C), jnp.float32)).astype(dtype)
        wproj = (0.02 * jax.random.normal(k3, (C, C), jnp.float32)).astype(dtype)
        bproj = (0.02 * jax.random.normal(k4, (1, C), jnp.float32)).astype(dtype)

        cos, sin, sin_a, sin_b = precompute_rope(hs, block_size)
        cos_t, sin_t, sa_t, sb_t = cos[:T], sin[:T], sin_a[:T], sin_b[:T]

        out = causal_self_attention(x, wqkv, bqkv, wproj, bproj,
                                    cos_t, sa_t, sb_t, n_head, tq=tq, tk=tk)
        out = jax.block_until_ready(out)

        ref = reference_jax(x, wqkv, bqkv, wproj, bproj, cos_t, sin_t, n_head)
        err = float(jnp.max(jnp.abs(out.astype(jnp.float32) - ref.astype(jnp.float32))))
        assert out.shape == (B, T, C) and math.isfinite(err) and err < 2e-2, \
            (out.shape, err)

    # Small config consistent with the module (n_embd=32, n_head=4, block_size=16).
    run_case(B=2, T=8, C=32, n_head=4, block_size=16)
    # Multi-tile config: exercises causal kv-tile skipping, the clamped kv DMA
    # index, and the multi-step online-softmax path (hs=64, 2 q x 2 kv tiles).
    run_case(B=1, T=256, C=256, n_head=4, block_size=256, tq=128, tk=128)

    print("KERNEL_OK")
</pallas_src>

<mosaic_0001>
module attributes {stable_mosaic.version = 11 : i64} {
  func.func @qkv_rope_kernel(%arg0: i32, %arg1: i32, %arg2: memref<1x8x32xbf16, #tpu.memory_space<vmem>>, %arg3: memref<32x96xbf16, #tpu.memory_space<vmem>>, %arg4: memref<1x96xbf16, #tpu.memory_space<vmem>>, %arg5: memref<8x8xf32, #tpu.memory_space<vmem>>, %arg6: memref<8x8xf32, #tpu.memory_space<vmem>>, %arg7: memref<8x8xf32, #tpu.memory_space<vmem>>, %arg8: memref<1x4x8x8xbf16, #tpu.memory_space<vmem>>, %arg9: memref<1x4x8x8xbf16, #tpu.memory_space<vmem>>, %arg10: memref<1x4x8x8xbf16, #tpu.memory_space<vmem>>) attributes {dimension_semantics = [#tpu.dimension_semantics<parallel>, #tpu.dimension_semantics<parallel>], iteration_bounds = array<i64: 2, 1>, scalar_prefetch = 0 : i64, scratch_operands = 0 : i64, tpu.core_type = #tpu.core_type<tc>, window_params = [{transform_indices = @transform_0, window_bounds = array<i64: 1, 8, 32>}, {pipeline_mode = #tpu.pipeline_mode<synchronous>, transform_indices = @transform_1, window_bounds = array<i64: 32, 96>}, {pipeline_mode = #tpu.pipeline_mode<synchronous>, transform_indices = @transform_2, window_bounds = array<i64: 1, 96>}, {transform_indices = @transform_3, window_bounds = array<i64: 8, 8>}, {transform_indices = @transform_4, window_bounds = array<i64: 8, 8>}, {transform_indices = @transform_5, window_bounds = array<i64: 8, 8>}, {transform_indices = @transform_6, window_bounds = array<i64: 1, 4, 8, 8>}, {transform_indices = @transform_7, window_bounds = array<i64: 1, 4, 8, 8>}, {transform_indices = @transform_8, window_bounds = array<i64: 1, 4, 8, 8>}]} {
    %c0 = arith.constant 0 : index
    %c0_0 = arith.constant 0 : index
    %c0_1 = arith.constant 0 : index
    %0 = vector.load %arg2[%c0, %c0_0, %c0_1] : memref<1x8x32xbf16, #tpu.memory_space<vmem>>, vector<1x8x32xbf16>
    %1 = vector.shape_cast %0 : vector<1x8x32xbf16> to vector<8x32xbf16>
    %c0_2 = arith.constant 0 : index
    %c0_3 = arith.constant 0 : index
    %2 = vector.load %arg3[%c0_2, %c0_3] : memref<32x96xbf16, #tpu.memory_space<vmem>>, vector<32x96xbf16>
    %cst = arith.constant dense<0.000000e+00> : vector<8x96xf32>
    %3 = tpu.matmul %1, %2, %cst {dimension_numbers = #tpu.dot_dimension_numbers<[1], [0], [0], [1], [0, 0, 1, 1], [], []>} : vector<8x32xbf16>, vector<32x96xbf16>, vector<8x96xf32> -> vector<8x96xf32>
    %c0_4 = arith.constant 0 : index
    %c0_5 = arith.constant 0 : index
    %4 = vector.load %arg4[%c0_4, %c0_5] : memref<1x96xbf16, #tpu.memory_space<vmem>>, vector<1x96xbf16>
    %5 = arith.extf %4 : vector<1x96xbf16> to vector<1x96xf32>
    %6 = vector.broadcast %5 : vector<1x96xf32> to vector<8x96xf32>
    %7 = arith.addf %3, %6 : vector<8x96xf32>
    %c0_6 = arith.constant 0 : index
    %c0_7 = arith.constant 0 : index
    %8 = vector.load %arg5[%c0_6, %c0_7] : memref<8x8xf32, #tpu.memory_space<vmem>>, vector<8x8xf32>
    %c0_8 = arith.constant 0 : index
    %c0_9 = arith.constant 0 : index
    %9 = vector.load %arg6[%c0_8, %c0_9] : memref<8x8xf32, #tpu.memory_space<vmem>>, vector<8x8xf32>
    %c0_10 = arith.constant 0 : index
    %c0_11 = arith.constant 0 : index
    %10 = vector.load %arg7[%c0_10, %c0_11] : memref<8x8xf32, #tpu.memory_space<vmem>>, vector<8x8xf32>
    %11 = vector.extract_strided_slice %7 {offsets = [0, 0], sizes = [8, 8], strides = [1, 1]} : vector<8x96xf32> to vector<8x8xf32>
    %12 = vector.extract_strided_slice %7 {offsets = [0, 32], sizes = [8, 8], strides = [1, 1]} : vector<8x96xf32> to vector<8x8xf32>
    %13 = vector.extract_strided_slice %7 {offsets = [0, 64], sizes = [8, 8], strides = [1, 1]} : vector<8x96xf32> to vector<8x8xf32>
    %14 = vector.extract_strided_slice %11 {offsets = [0, 1], sizes = [8, 7], strides = [1, 1]} : vector<8x8xf32> to vector<8x7xf32>
    %15 = vector.extract_strided_slice %11 {offsets = [0, 0], sizes = [8, 1], strides = [1, 1]} : vector<8x8xf32> to vector<8x1xf32>
    %16 = tpu.concatenate %14, %15 in 1 : vector<8x7xf32>, vector<8x1xf32> -> vector<8x8xf32>
    %17 = vector.extract_strided_slice %11 {offsets = [0, 7], sizes = [8, 1], strides = [1, 1]} : vector<8x8xf32> to vector<8x1xf32>
    %18 = vector.extract_strided_slice %11 {offsets = [0, 0], sizes = [8, 7], strides = [1, 1]} : vector<8x8xf32> to vector<8x7xf32>
    %19 = tpu.concatenate %17, %18 in 1 : vector<8x1xf32>, vector<8x7xf32> -> vector<8x8xf32>
    %20 = arith.mulf %11, %8 : vector<8x8xf32>
    %21 = arith.mulf %16, %9 : vector<8x8xf32>
    %22 = arith.addf %20, %21 : vector<8x8xf32>
    %23 = arith.mulf %19, %10 : vector<8x8xf32>
    %24 = arith.addf %22, %23 : vector<8x8xf32>
    %25 = arith.truncf %24 : vector<8x8xf32> to vector<8x8xbf16>
    %c0_12 = arith.constant 0 : index
    %c0_13 = arith.constant 0 : index
    %c0_14 = arith.constant 0 : index
    %c0_15 = arith.constant 0 : index
    %26 = vector.load %arg8[%c0_12, %c0_13, %c0_14, %c0_15] : memref<1x4x8x8xbf16, #tpu.memory_space<vmem>>, vector<1x1x8x8xbf16>
    %27 = vector.shape_cast %26 : vector<1x1x8x8xbf16> to vector<8x8xbf16>
    %28 = vector.shape_cast %25 : vector<8x8xbf16> to vector<1x1x8x8xbf16>
    tpu.vector_store %arg8[%c0_12, %c0_13, %c0_14, %c0_15], %28 {strides = array<i32>} : memref<1x4x8x8xbf16, #tpu.memory_space<vmem>>, vector<1x1x8x8xbf16>,
    %29 = vector.extract_strided_slice %12 {offsets = [0, 1], sizes = [8, 7], strides = [1, 1]} : vector<8x8xf32> to vector<8x7xf32>
    %30 = vector.extract_strided_slice %12 {offsets = [0, 0], sizes = [8, 1], strides = [1, 1]} : vector<8x8xf32> to vector<8x1xf32>
    %31 = tpu.concatenate %29, %30 in 1 : vector<8x7xf32>, vector<8x1xf32> -> vector<8x8xf32>
    %32 = vector.extract_strided_slice %12 {offsets = [0, 7], sizes = [8, 1], strides = [1, 1]} : vector<8x8xf32> to vector<8x1xf32>
    %33 = vector.extract_strided_slice %12 {offsets = [0, 0], sizes = [8, 7], strides = [1, 1]} : vector<8x8xf32> to vector<8x7xf32>
    %34 = tpu.concatenate %32, %33 in 1 : vector<8x1xf32>, vector<8x7xf32> -> vector<8x8xf32>
    %35 = arith.mulf %12, %8 : vector<8x8xf32>
    %36 = arith.mulf %31, %9 : vector<8x8xf32>
    %37 = arith.addf %35, %36 : vector<8x8xf32>
    %38 = arith.mulf %34, %10 : vector<8x8xf32>
    %39 = arith.addf %37, %38 : vector<8x8xf32>
    %40 = arith.truncf %39 : vector<8x8xf32> to vector<8x8xbf16>
    %c0_16 = arith.constant 0 : index
    %c0_17 = arith.constant 0 : index
    %c0_18 = arith.constant 0 : index
    %c0_19 = arith.constant 0 : index
    %41 = vector.load %arg9[%c0_16, %c0_17, %c0_18, %c0_19] : memref<1x4x8x8xbf16, #tpu.memory_space<vmem>>, vector<1x1x8x8xbf16>
    %42 = vector.shape_cast %41 : vector<1x1x8x8xbf16> to vector<8x8xbf16>
    %43 = vector.shape_cast %40 : vector<8x8xbf16> to vector<1x1x8x8xbf16>
    tpu.vector_store %arg9[%c0_16, %c0_17, %c0_18, %c0_19], %43 {strides = array<i32>} : memref<1x4x8x8xbf16, #tpu.memory_space<vmem>>, vector<1x1x8x8xbf16>,
    %44 = arith.truncf %13 : vector<8x8xf32> to vector<8x8xbf16>
    %c0_20 = arith.constant 0 : index
    %c0_21 = arith.constant 0 : index
    %c0_22 = arith.constant 0 : index
    %c0_23 = arith.constant 0 : index
    %45 = vector.load %arg10[%c0_20, %c0_21, %c0_22, %c0_23] : memref<1x4x8x8xbf16, #tpu.memory_space<vmem>>, vector<1x1x8x8xbf16>
    %46 = vector.shape_cast %45 : vector<1x1x8x8xbf16> to vector<8x8xbf16>
    %47 = vector.shape_cast %44 : vector<8x8xbf16> to vector<1x1x8x8xbf16>
    tpu.vector_store %arg10[%c0_20, %c0_21, %c0_22, %c0_23], %47 {strides = array<i32>} : memref<1x4x8x8xbf16, #tpu.memory_space<vmem>>, vector<1x1x8x8xbf16>,
    %48 = vector.extract_strided_slice %7 {offsets = [0, 8], sizes = [8, 8], strides = [1, 1]} : vector<8x96xf32> to vector<8x8xf32>
    %49 = vector.extract_strided_slice %7 {offsets = [0, 40], sizes = [8, 8], strides = [1, 1]} : vector<8x96xf32> to vector<8x8xf32>
    %50 = vector.extract_strided_slice %7 {offsets = [0, 72], sizes = [8, 8], strides = [1, 1]} : vector<8x96xf32> to vector<8x8xf32>
    %51 = vector.extract_strided_slice %48 {offsets = [0, 1], sizes = [8, 7], strides = [1, 1]} : vector<8x8xf32> to vector<8x7xf32>
    %52 = vector.extract_strided_slice %48 {offsets = [0, 0], sizes = [8, 1], strides = [1, 1]} : vector<8x8xf32> to vector<8x1xf32>
    %53 = tpu.concatenate %51, %52 in 1 : vector<8x7xf32>, vector<8x1xf32> -> vector<8x8xf32>
    %54 = vector.extract_strided_slice %48 {offsets = [0, 7], sizes = [8, 1], strides = [1, 1]} : vector<8x8xf32> to vector<8x1xf32>
    %55 = vector.extract_strided_slice %48 {offsets = [0, 0], sizes = [8, 7], strides = [1, 1]} : vector<8x8xf32> to vector<8x7xf32>
    %56 = tpu.concatenate %54, %55 in 1 : vector<8x1xf32>, vector<8x7xf32> -> vector<8x8xf32>
    %57 = arith.mulf %48, %8 : vector<8x8xf32>
    %58 = arith.mulf %53, %9 : vector<8x8xf32>
    %59 = arith.addf %57, %58 : vector<8x8xf32>
    %60 = arith.mulf %56, %10 : vector<8x8xf32>
    %61 = arith.addf %59, %60 : vector<8x8xf32>
    %62 = arith.truncf %61 : vector<8x8xf32> to vector<8x8xbf16>
    %c0_24 = arith.constant 0 : index
    %c1 = arith.constant 1 : index
    %c0_25 = arith.constant 0 : index
    %c0_26 = arith.constant 0 : index
    %63 = vector.load %arg8[%c0_24, %c1, %c0_25, %c0_26] : memref<1x4x8x8xbf16, #tpu.memory_space<vmem>>, vector<1x1x8x8xbf16>
    %64 = vector.shape_cast %63 : vector<1x1x8x8xbf16> to vector<8x8xbf16>
    %65 = vector.shape_cast %62 : vector<8x8xbf16> to vector<1x1x8x8xbf16>
    tpu.vector_store %arg8[%c0_24, %c1, %c0_25, %c0_26], %65 {strides = array<i32>} : memref<1x4x8x8xbf16, #tpu.memory_space<vmem>>, vector<1x1x8x8xbf16>,
    %66 = vector.extract_strided_slice %49 {offsets = [0, 1], sizes = [8, 7], strides = [1, 1]} : vector<8x8xf32> to vector<8x7xf32>
    %67 = vector.extract_strided_slice %49 {offsets = [0, 0], sizes = [8, 1], strides = [1, 1]} : vector<8x8xf32> to vector<8x1xf32>
    %68 = tpu.concatenate %66, %67 in 1 : vector<8x7xf32>, vector<8x1xf32> -> vector<8x8xf32>
    %69 = vector.extract_strided_slice %49 {offsets = [0, 7], sizes = [8, 1], strides = [1, 1]} : vector<8x8xf32> to vector<8x1xf32>
    %70 = vector.extract_strided_slice %49 {offsets = [0, 0], sizes = [8, 7], strides = [1, 1]} : vector<8x8xf32> to vector<8x7xf32>
    %71 = tpu.concatenate %69, %70 in 1 : vector<8x1xf32>, vector<8x7xf32> -> vector<8x8xf32>
    %72 = arith.mulf %49, %8 : vector<8x8xf32>
    %73 = arith.mulf %68, %9 : vector<8x8xf32>
    %74 = arith.addf %72, %73 : vector<8x8xf32>
    %75 = arith.mulf %71, %10 : vector<8x8xf32>
    %76 = arith.addf %74, %75 : vector<8x8xf32>
    %77 = arith.truncf %76 : vector<8x8xf32> to vector<8x8xbf16>
    %c0_27 = arith.constant 0 : index
    %c1_28 = arith.constant 1 : index
    %c0_29 = arith.constant 0 : index
    %c0_30 = arith.constant 0 : index
    %78 = vector.load %arg9[%c0_27, %c1_28, %c0_29, %c0_30] : memref<1x4x8x8xbf16, #tpu.memory_space<vmem>>, vector<1x1x8x8xbf16>
    %79 = vector.shape_cast %78 : vector<1x1x8x8xbf16> to vector<8x8xbf16>
    %80 = vector.shape_cast %77 : vector<8x8xbf16> to vector<1x1x8x8xbf16>
    tpu.vector_store %arg9[%c0_27, %c1_28, %c0_29, %c0_30], %80 {strides = array<i32>} : memref<1x4x8x8xbf16, #tpu.memory_space<vmem>>, vector<1x1x8x8xbf16>,
    %81 = arith.truncf %50 : vector<8x8xf32> to vector<8x8xbf16>
    %c0_31 = arith.constant 0 : index
    %c1_32 = arith.constant 1 : index
    %c0_33 = arith.constant 0 : index
    %c0_34 = arith.constant 0 : index
    %82 = vector.load %arg10[%c0_31, %c1_32, %c0_33, %c0_34] : memref<1x4x8x8xbf16, #tpu.memory_space<vmem>>, vector<1x1x8x8xbf16>
    %83 = vector.shape_cast %82 : vector<1x1x8x8xbf16> to vector<8x8xbf16>
    %84 = vector.shape_cast %81 : vector<8x8xbf16> to vector<1x1x8x8xbf16>
    tpu.vector_store %arg10[%c0_31, %c1_32, %c0_33, %c0_34], %84 {strides = array<i32>} : memref<1x4x8x8xbf16, #tpu.memory_space<vmem>>, vector<1x1x8x8xbf16>,
    %85 = vector.extract_strided_slice %7 {offsets = [0, 16], sizes = [8, 8], strides = [1, 1]} : vector<8x96xf32> to vector<8x8xf32>
    %86 = vector.extract_strided_slice %7 {offsets = [0, 48], sizes = [8, 8], strides = [1, 1]} : vector<8x96xf32> to vector<8x8xf32>
    %87 = vector.extract_strided_slice %7 {offsets = [0, 80], sizes = [8, 8], strides = [1, 1]} : vector<8x96xf32> to vector<8x8xf32>
    %88 = vector.extract_strided_slice %85 {offsets = [0, 1], sizes = [8, 7], strides = [1, 1]} : vector<8x8xf32> to vector<8x7xf32>
    %89 = vector.extract_strided_slice %85 {offsets = [0, 0], sizes = [8, 1], strides = [1, 1]} : vector<8x8xf32> to vector<8x1xf32>
    %90 = tpu.concatenate %88, %89 in 1 : vector<8x7xf32>, vector<8x1xf32> -> vector<8x8xf32>
    %91 = vector.extract_strided_slice %85 {offsets = [0, 7], sizes = [8, 1], strides = [1, 1]} : vector<8x8xf32> to vector<8x1xf32>
    %92 = vector.extract_strided_slice %85 {offsets = [0, 0], sizes = [8, 7], strides = [1, 1]} : vector<8x8xf32> to vector<8x7xf32>
    %93 = tpu.concatenate %91, %92 in 1 : vector<8x1xf32>, vector<8x7xf32> -> vector<8x8xf32>
    %94 = arith.mulf %85, %8 : vector<8x8xf32>
    %95 = arith.mulf %90, %9 : vector<8x8xf32>
    %96 = arith.addf %94, %95 : vector<8x8xf32>
    %97 = arith.mulf %93, %10 : vector<8x8xf32>
    %98 = arith.addf %96, %97 : vector<8x8xf32>
    %99 = arith.truncf %98 : vector<8x8xf32> to vector<8x8xbf16>
    %c0_35 = arith.constant 0 : index
    %c2 = arith.constant 2 : index
    %c0_36 = arith.constant 0 : index
    %c0_37 = arith.constant 0 : index
    %100 = vector.load %arg8[%c0_35, %c2, %c0_36, %c0_37] : memref<1x4x8x8xbf16, #tpu.memory_space<vmem>>, vector<1x1x8x8xbf16>
    %101 = vector.shape_cast %100 : vector<1x1x8x8xbf16> to vector<8x8xbf16>
    %102 = vector.shape_cast %99 : vector<8x8xbf16> to vector<1x1x8x8xbf16>
    tpu.vector_store %arg8[%c0_35, %c2, %c0_36, %c0_37], %102 {strides = array<i32>} : memref<1x4x8x8xbf16, #tpu.memory_space<vmem>>, vector<1x1x8x8xbf16>,
    %103 = vector.extract_strided_slice %86 {offsets = [0, 1], sizes = [8, 7], strides = [1, 1]} : vector<8x8xf32> to vector<8x7xf32>
    %104 = vector.extract_strided_slice %86 {offsets = [0, 0], sizes = [8, 1], strides = [1, 1]} : vector<8x8xf32> to vector<8x1xf32>
    %105 = tpu.concatenate %103, %104 in 1 : vector<8x7xf32>, vector<8x1xf32> -> vector<8x8xf32>
    %106 = vector.extract_strided_slice %86 {offsets = [0, 7], sizes = [8, 1], strides = [1, 1]} : vector<8x8xf32> to vector<8x1xf32>
    %107 = vector.extract_strided_slice %86 {offsets = [0, 0], sizes = [8, 7], strides = [1, 1]} : vector<8x8xf32> to vector<8x7xf32>
    %108 = tpu.concatenate %106, %107 in 1 : vector<8x1xf32>, vector<8x7xf32> -> vector<8x8xf32>
    %109 = arith.mulf %86, %8 : vector<8x8xf32>
    %110 = arith.mulf %105, %9 : vector<8x8xf32>
    %111 = arith.addf %109, %110 : vector<8x8xf32>
    %112 = arith.mulf %108, %10 : vector<8x8xf32>
    %113 = arith.addf %111, %112 : vector<8x8xf32>
    %114 = arith.truncf %113 : vector<8x8xf32> to vector<8x8xbf16>
    %c0_38 = arith.constant 0 : index
    %c2_39 = arith.constant 2 : index
    %c0_40 = arith.constant 0 : index
    %c0_41 = arith.constant 0 : index
    %115 = vector.load %arg9[%c0_38, %c2_39, %c0_40, %c0_41] : memref<1x4x8x8xbf16, #tpu.memory_space<vmem>>, vector<1x1x8x8xbf16>
    %116 = vector.shape_cast %115 : vector<1x1x8x8xbf16> to vector<8x8xbf16>
    %117 = vector.shape_cast %114 : vector<8x8xbf16> to vector<1x1x8x8xbf16>
    tpu.vector_store %arg9[%c0_38, %c2_39, %c0_40, %c0_41], %117 {strides = array<i32>} : memref<1x4x8x8xbf16, #tpu.memory_space<vmem>>, vector<1x1x8x8xbf16>,
    %118 = arith.truncf %87 : vector<8x8xf32> to vector<8x8xbf16>
    %c0_42 = arith.constant 0 : index
    %c2_43 = arith.constant 2 : index
    %c0_44 = arith.constant 0 : index
    %c0_45 = arith.constant 0 : index
    %119 = vector.load %arg10[%c0_42, %c2_43, %c0_44, %c0_45] : memref<1x4x8x8xbf16, #tpu.memory_space<vmem>>, vector<1x1x8x8xbf16>
    %120 = vector.shape_cast %119 : vector<1x1x8x8xbf16> to vector<8x8xbf16>
    %121 = vector.shape_cast %118 : vector<8x8xbf16> to vector<1x1x8x8xbf16>
    tpu.vector_store %arg10[%c0_42, %c2_43, %c0_44, %c0_45], %121 {strides = array<i32>} : memref<1x4x8x8xbf16, #tpu.memory_space<vmem>>, vector<1x1x8x8xbf16>,
    %122 = vector.extract_strided_slice %7 {offsets = [0, 24], sizes = [8, 8], strides = [1, 1]} : vector<8x96xf32> to vector<8x8xf32>
    %123 = vector.extract_strided_slice %7 {offsets = [0, 56], sizes = [8, 8], strides = [1, 1]} : vector<8x96xf32> to vector<8x8xf32>
    %124 = vector.extract_strided_slice %7 {offsets = [0, 88], sizes = [8, 8], strides = [1, 1]} : vector<8x96xf32> to vector<8x8xf32>
    %125 = vector.extract_strided_slice %122 {offsets = [0, 1], sizes = [8, 7], strides = [1, 1]} : vector<8x8xf32> to vector<8x7xf32>
    %126 = vector.extract_strided_slice %122 {offsets = [0, 0], sizes = [8, 1], strides = [1, 1]} : vector<8x8xf32> to vector<8x1xf32>
    %127 = tpu.concatenate %125, %126 in 1 : vector<8x7xf32>, vector<8x1xf32> -> vector<8x8xf32>
    %128 = vector.extract_strided_slice %122 {offsets = [0, 7], sizes = [8, 1], strides = [1, 1]} : vector<8x8xf32> to vector<8x1xf32>
    %129 = vector.extract_strided_slice %122 {offsets = [0, 0], sizes = [8, 7], strides = [1, 1]} : vector<8x8xf32> to vector<8x7xf32>
    %130 = tpu.concatenate %128, %129 in 1 : vector<8x1xf32>, vector<8x7xf32> -> vector<8x8xf32>
    %131 = arith.mulf %122, %8 : vector<8x8xf32>
    %132 = arith.mulf %127, %9 : vector<8x8xf32>
    %133 = arith.addf %131, %132 : vector<8x8xf32>
    %134 = arith.mulf %130, %10 : vector<8x8xf32>
    %135 = arith.addf %133, %134 : vector<8x8xf32>
    %136 = arith.truncf %135 : vector<8x8xf32> to vector<8x8xbf16>
    %c0_46 = arith.constant 0 : index
    %c3 = arith.constant 3 : index
    %c0_47 = arith.constant 0 : index
    %c0_48 = arith.constant 0 : index
    %137 = vector.load %arg8[%c0_46, %c3, %c0_47, %c0_48] : memref<1x4x8x8xbf16, #tpu.memory_space<vmem>>, vector<1x1x8x8xbf16>
    %138 = vector.shape_cast %137 : vector<1x1x8x8xbf16> to vector<8x8xbf16>
    %139 = vector.shape_cast %136 : vector<8x8xbf16> to vector<1x1x8x8xbf16>
    tpu.vector_store %arg8[%c0_46, %c3, %c0_47, %c0_48], %139 {strides = array<i32>} : memref<1x4x8x8xbf16, #tpu.memory_space<vmem>>, vector<1x1x8x8xbf16>,
    %140 = vector.extract_strided_slice %123 {offsets = [0, 1], sizes = [8, 7], strides = [1, 1]} : vector<8x8xf32> to vector<8x7xf32>
    %141 = vector.extract_strided_slice %123 {offsets = [0, 0], sizes = [8, 1], strides = [1, 1]} : vector<8x8xf32> to vector<8x1xf32>
    %142 = tpu.concatenate %140, %141 in 1 : vector<8x7xf32>, vector<8x1xf32> -> vector<8x8xf32>
    %143 = vector.extract_strided_slice %123 {offsets = [0, 7], sizes = [8, 1], strides = [1, 1]} : vector<8x8xf32> to vector<8x1xf32>
    %144 = vector.extract_strided_slice %123 {offsets = [0, 0], sizes = [8, 7], strides = [1, 1]} : vector<8x8xf32> to vector<8x7xf32>
    %145 = tpu.concatenate %143, %144 in 1 : vector<8x1xf32>, vector<8x7xf32> -> vector<8x8xf32>
    %146 = arith.mulf %123, %8 : vector<8x8xf32>
    %147 = arith.mulf %142, %9 : vector<8x8xf32>
    %148 = arith.addf %146, %147 : vector<8x8xf32>
    %149 = arith.mulf %145, %10 : vector<8x8xf32>
    %150 = arith.addf %148, %149 : vector<8x8xf32>
    %151 = arith.truncf %150 : vector<8x8xf32> to vector<8x8xbf16>
    %c0_49 = arith.constant 0 : index
    %c3_50 = arith.constant 3 : index
    %c0_51 = arith.constant 0 : index
    %c0_52 = arith.constant 0 : index
    %152 = vector.load %arg9[%c0_49, %c3_50, %c0_51, %c0_52] : memref<1x4x8x8xbf16, #tpu.memory_space<vmem>>, vector<1x1x8x8xbf16>
    %153 = vector.shape_cast %152 : vector<1x1x8x8xbf16> to vector<8x8xbf16>
    %154 = vector.shape_cast %151 : vector<8x8xbf16> to vector<1x1x8x8xbf16>
    tpu.vector_store %arg9[%c0_49, %c3_50, %c0_51, %c0_52], %154 {strides = array<i32>} : memref<1x4x8x8xbf16, #tpu.memory_space<vmem>>, vector<1x1x8x8xbf16>,
    %155 = arith.truncf %124 : vector<8x8xf32> to vector<8x8xbf16>
    %c0_53 = arith.constant 0 : index
    %c3_54 = arith.constant 3 : index
    %c0_55 = arith.constant 0 : index
    %c0_56 = arith.constant 0 : index
    %156 = vector.load %arg10[%c0_53, %c3_54, %c0_55, %c0_56] : memref<1x4x8x8xbf16, #tpu.memory_space<vmem>>, vector<1x1x8x8xbf16>
    %157 = vector.shape_cast %156 : vector<1x1x8x8xbf16> to vector<8x8xbf16>
    %158 = vector.shape_cast %155 : vector<8x8xbf16> to vector<1x1x8x8xbf16>
    tpu.vector_store %arg10[%c0_53, %c3_54, %c0_55, %c0_56], %158 {strides = array<i32>} : memref<1x4x8x8xbf16, #tpu.memory_space<vmem>>, vector<1x1x8x8xbf16>,
    return
  }
  func.func @transform_0(%arg0: i32, %arg1: i32) -> (i32, i32, i32) {
    %c0_i32 = arith.constant 0 : i32
    %c0_i32_0 = arith.constant 0 : i32
    return %arg0, %arg1, %c0_i32 : i32, i32, i32
  }
  func.func @transform_1(%arg0: i32, %arg1: i32) -> (i32, i32) {
    %c0_i32 = arith.constant 0 : i32
    %c0_i32_0 = arith.constant 0 : i32
    %c0_i32_1 = arith.constant 0 : i32
    return %c0_i32, %c0_i32_0 : i32, i32
  }
  func.func @transform_2(%arg0: i32, %arg1: i32) -> (i32, i32) {
    %c0_i32 = arith.constant 0 : i32
    %c0_i32_0 = arith.constant 0 : i32
    %c0_i32_1 = arith.constant 0 : i32
    return %c0_i32, %c0_i32_0 : i32, i32
  }
  func.func @transform_3(%arg0: i32, %arg1: i32) -> (i32, i32) {
    %c0_i32 = arith.constant 0 : i32
    %c0_i32_0 = arith.constant 0 : i32
    return %arg1, %c0_i32 : i32, i32
  }
  func.func @transform_4(%arg0: i32, %arg1: i32) -> (i32, i32) {
    %c0_i32 = arith.constant 0 : i32
    %c0_i32_0 = arith.constant 0 : i32
    return %arg1, %c0_i32 : i32, i32
  }
  func.func @transform_5(%arg0: i32, %arg1: i32) -> (i32, i32) {
    %c0_i32 = arith.constant 0 : i32
    %c0_i32_0 = arith.constant 0 : i32
    return %arg1, %c0_i32 : i32, i32
  }
  func.func @transform_6(%arg0: i32, %arg1: i32) -> (i32, i32, i32, i32) {
    %c0_i32 = arith.constant 0 : i32
    %c0_i32_0 = arith.constant 0 : i32
    %c0_i32_1 = arith.constant 0 : i32
    return %arg0, %c0_i32, %arg1, %c0_i32_0 : i32, i32, i32, i32
  }
  func.func @transform_7(%arg0: i32, %arg1: i32) -> (i32, i32, i32, i32) {
    %c0_i32 = arith.constant 0 : i32
    %c0_i32_0 = arith.constant 0 : i32
    %c0_i32_1 = arith.constant 0 : i32
    return %arg0, %c0_i32, %arg1, %c0_i32_0 : i32, i32, i32, i32
  }
  func.func @transform_8(%arg0: i32, %arg1: i32) -> (i32, i32, i32, i32) {
    %c0_i32 = arith.constant 0 : i32
    %c0_i32_0 = arith.constant 0 : i32
    %c0_i32_1 = arith.constant 0 : i32
    return %arg0, %c0_i32, %arg1, %c0_i32_0 : i32, i32, i32, i32
  }
}

</mosaic_0001>

<bundles_post_ra>
// kernel: tpu_custom_call.1
= control target key start
LH: loop header
LB: loop body
LE: loop exit
PB: predicated region body
PF: predicated region fallthrough
CT: control target
= control target key end

     0   :  { %s2040_s0 = inlined_call_operand.hbm [shape: bf16[2,8,32], index: 0, kind: input, shape index: {}]   ;;  %s2041_s1 = inlined_call_operand.hbm [shape: bf16[32,96], index: 1, kind: input, shape index: {}]   ;;  %s2042_s2 = inlined_call_operand.vmem [shape: bf16[1,96], index: 2, kind: input, shape index: {}]   ;;  %s2043_s3 = inlined_call_operand.vmem [shape: f32[8,8], index: 3, kind: input, shape index: {}]   ;;  %s2044_s4 = inlined_call_operand.hbm [shape: f32[8,8], index: 4, kind: input, shape index: {}]   ;;  %s2045_s5 = inlined_call_operand.vmem [shape: f32[8,8], index: 5, kind: input, shape index: {}]   ;;  %s2046_s6 = inlined_call_operand.hbm [shape: bf16[2,4,8,8], index: 6, kind: output, shape index: {0}]   ;;  %s2047_s7 = inlined_call_operand.hbm [shape: bf16[2,4,8,8], index: 7, kind: output, shape index: {1}]   ;;  %s2048_s8 = inlined_call_operand.hbm [shape: bf16[2,4,8,8], index: 8, kind: output, shape index: {2}]  }
   0x1   :  { %2057 = sst [smem:[#allocation18_spill]] %s2040_s0 }
   0x2   :  { %2058 = sst [smem:[#allocation19_spill]] %s2041_s1 }
   0x3   :  { %14 = vsyncpa [#allocation3], 0 }
   0x4   :  { %16 = vsyncpa [#allocation3 + $0x1], 0 }
   0x5   :  { %17 = vsyncpa [#allocation6], 0 }
   0x6   :  { %18 = vsyncpa [#allocation4], 0 }
   0x7   :  { %20 = vsyncpa [#allocation4 + $0x1], 0 }
   0x8   :  { %21 = vsyncpa [#allocation10], 0 }
   0x9   :  { %23 = vsyncpa [#allocation10 + $0x1], 0  ;;  %s1563_s27 = smov 0   ;;  %s1565_s28 = smov 0  }
   0xa   :  { %s1567_s29 = smov 0   ;;  %s1569_s30 = smov 0  }
   0xb   :  { %s1571_s9 = smov 0   ;;  %s1573_s10 = smov 0  }
   0xc LB: > { %2059 = sst [smem:[#allocation16_spill]] %s1452_s27  ;;  %s1594_s11 = sadd.s32 4294967295, %s1472_s10   ;;  %s1472_s10 = sphi %s1573_s10, %s29_s10   ;;  %s1468_s9 = sphi %s1571_s9, %s2084_s9   ;;  %s1464_s30 = sphi %s1569_s30, %s2083_s30   ;;  %s1460_s29 = sphi %s1567_s29, %s2082_s29   ;;  %s1456_s28 = sphi %s1565_s28, %s2081_s28   ;;  %s1452_s27 = sphi %s1563_s27, %s2080_s27  }
   0xd   : > { %s2050_s12 = sadd.s32 4294967294, %s1472_s10   ;;  %p63_p0 = scmp.ne.s32.totalorder %s1456_s28, %s1452_s27 }
   0xe   : > { %p2049_p1 = scmp.eq.s32.totalorder %s1594_s11, 0  ;;  %p215_p3 = scmp.eq.s32.totalorder %s2050_s12, 1 }
   0xf   : > { %p1039_p5 = scmp.ge.s32.totalorder %s1472_s10, 1  ;;  %p278_p7 = scmp.lt.s32.totalorder %s1472_s10, 3 }
  0x10   : > { %p1605_p4 = por %p2049_p1, %p63_p0  ;;  %p1610_p6 = por %p215_p3, %p63_p0 }
  0x11   : > { %p1615_p8 = pnand %p1039_p5, %p278_p7  ;;  %s1474_s16 = smov [#allocation5]  }
  0x12   : > { %s2060_s13 = scalar_select %p1605_p4, 1, 0 }
  0x13   : > { %s2061_s14 = scalar_select %p1610_p6, 1, 0 }
  0x14   : > { %s290_s17 = sshll.u32 %s1474_s16, 4  ;;  %p1123_p9 = pneg %p1615_p8  ;;  %s1619_s17 = int_to_ptr.vmem [resolvable:$true] %s290_s17 }
  0x15   : > { %2062 = sst [smem:[#allocation17_spill]] %s2061_s14  ;;  %s1475_s19 = smov [#allocation7]  }
  0x16   : > { %p1626_p11 = pnand %p1123_p9, %p2049_p1  ;;  %s316_s20 = sshll.u32 %s1475_s19, 4  ;;  %s1630_s20 = int_to_ptr.vmem [resolvable:$true] %s316_s20 }
  0x17   : > { %s2065_s1 = sld [smem:[#allocation19_spill]] }
  0x18   : > { %p1242_p13 = pneg %p1626_p11 }
  0x1d   : > { %s1240_s23 = scalar_lea.hbm %s2065_s1, 256 }
  0x1e   : > { %p1241_p12 = scmp.ne.s32.totalorder %s2065_s1, %s1240_s23  ;;  %p1247_p5 = scmp.lt.u32.totalorder %s1240_s23, %s2065_s1 }
  0x20   : > { %p1243_p0 = pnand %p1242_p13, %p1241_p12 }
  0x22   : > { %p1244_p3 = pneg %p1243_p0 }
  0x24   : > { %p1249_p7 = pnand %p1247_p5, %p1244_p3 }
  0x26   : > { %1252 = shalt.err (!%p1249_p7)
}
  0x27   : > { %s1253_s19 = scalar_lea.vmem %s1619_s17, 256  ;;  %p1261_p2 = scmp.lt.s32.totalorder %s1619_s17, %s1619_s17 }
  0x28   : > { %p1254_p9 = scmp.ne.s32.totalorder %s1619_s17, %s1253_s19  ;;  %p1262_p12 = scmp.lt.s32.totalorder %s1253_s19, %s1253_s19 }
  0x2a   : > { %p1256_p10 = pnand %p1254_p9, %p1242_p13  ;;  %p1263_p0 = por %p1262_p12, %p1261_p2 }
  0x2c   : > { %p1257_p1 = pneg %p1256_p10 }
  0x2e   : > { %p1264_p6 = pnand %p1263_p0, %p1257_p1 }
  0x30   : > { %1267 = shalt.err (!%p1264_p6)
}
  0x31   : > { %s1476_s21 = smov 64   ;;  %s1477_s22 = smov 4  }
  0x32   : > { %1126 = dma.hbm_to_vmem [thread:$0]  (!%p1626_p11), %s2065_s1, 256, %s1619_s17, [#allocation6], %s1476_s21, %s1476_s21, %s1477_s22  }
  0x33   : > { %s1268_s16 = scalar_lea.hbm %s2044_s4, 128 }
  0x34   : > { %p1269_p2 = scmp.ne.s32.totalorder %s2044_s4, %s1268_s16  ;;  %p1275_p10 = scmp.lt.u32.totalorder %s1268_s16, %s2044_s4 }
  0x36   : > { %p1271_p1 = pnand %p1269_p2, %p1242_p13 }
  0x38   : > { %p1272_p6 = pneg %p1271_p1 }
  0x3a   : > { %p1277_p3 = pnand %p1275_p10, %p1272_p6 }
  0x3c   : > { %1280 = shalt.err (!%p1277_p3)
}
  0x3d   : > { %s1281_s17 = scalar_lea.vmem %s1630_s20, 128  ;;  %p1289_p12 = scmp.lt.s32.totalorder %s1630_s20, %s1630_s20 }
  0x3e   : > { %p1282_p5 = scmp.ne.s32.totalorder %s1630_s20, %s1281_s17  ;;  %p1290_p0 = scmp.lt.s32.totalorder %s1281_s17, %s1281_s17 }
  0x40   : > { %p1284_p7 = pnand %p1282_p5, %p1242_p13  ;;  %p1291_p2 = por %p1290_p0, %p1289_p12 }
  0x42   : > { %p1285_p9 = pneg %p1284_p7 }
  0x44   : > { %p1292_p1 = pnand %p1291_p2, %p1285_p9 }
  0x46   : > { %1295 = shalt.err (!%p1292_p1)
}
  0x47   : > { %1129 = dma.hbm_to_vmem [thread:$0]  (!%p1626_p11), %s2044_s4, 128, %s1630_s20, [#allocation6]  }
  0x48   : > { %s41_s14 = sadd.s32 1, %s1468_s9  ;;  %s50_s21 = sadd.s32 1, %s1460_s29 }
  0x49   : > { %p43_p13 = scmp.ge.s32.totalorder %s41_s14, 2  ;;  %p57_p6 = scmp.ne.s32.totalorder %s1460_s29, %s1456_s28 }
  0x4a   : > { %p58_p10 = scmp.eq.s32.totalorder %s1472_s10, 0  ;;  %p1146_p3 = scmp.lt.s32.totalorder %s1472_s10, 2 }
  0x4b   : > { %s2086_s14 = smov (%p43_p13, %s41_s14), 0  ;;  %p2066_p7 = scmp.eq.s32.totalorder %s1594_s11, 1 }
  0x4c   : > { %p59_p5 = por %p58_p10, %p57_p6  ;;  %s45_s22 = ssub.s32 %s1468_s9, %s2086_s14 }
  0x4d   : > { %p1694_p9 = por %p2066_p7, %p57_p6  ;;  %s334_s23 = sand.u32 1, %s1460_s29  }
  0x4e   : > { %p48_p12 = scmp.eq.s32.totalorder %s45_s22, 0  ;;  %s1045_s20 = sshll.u32 %s334_s23, 2 }
  0x4f   : > { %s2067_s18 = scalar_select %p1694_p9, 1, 0 }
  0x50   : > { %s1046_s24 = sshll.u32 %s1468_s9, 6  ;;  %s2068_s0 = sld [smem:[#allocation18_spill]] }
  0x51   : > { %s1703_s25 = scalar_select %p48_p12, %s1460_s29, %s50_s21  }
  0x52   : > { %s338_s17 = scalar_lea.vmem [#allocation2], %s1045_s20  ;;  %p1712_p11 = pnand %p1146_p3, %p59_p5 }
  0x53   : > { %s346_s27 = sshll.u32 %s338_s17, 4  ;;  %s335_s21 = scalar_lea.sflag [#allocation3], %s334_s23  ;;  %s1716_s27 = int_to_ptr.vmem [resolvable:$true] %s346_s27 }
  0x54   : > { %p1298_p2 = pneg %p1712_p11 }
  0x56   : > { %s1708_s19 = scalar_lea.hbm %s2068_s0, %s1046_s24  ;;  %s1301_s26 = scalar_lea.hbm %s2068_s0, 128 }
  0x57   : > { %s1296_s22 = scalar_lea.hbm %s1708_s19, 64  ;;  %p1302_p6 = scmp.lt.u32.totalorder %s1708_s19, %s2068_s0 }
  0x58   : > { %p1297_p0 = scmp.ne.s32.totalorder %s1708_s19, %s1296_s22  ;;  %p1303_p10 = scmp.lt.u32.totalorder %s1301_s26, %s1296_s22 }
  0x59   : > { %p1305_p5 = scmp.lt.u32.totalorder %s1296_s22, %s1708_s19 }
  0x5a   : > { %p1299_p1 = pnand %p1298_p2, %p1297_p0  ;;  %p1304_p3 = por %p1303_p10, %p1302_p6 }
  0x5c   : > { %p1300_p13 = pneg %p1299_p1  ;;  %p1306_p7 = por %p1305_p5, %p1304_p3 }
  0x5e   : > { %p1307_p12 = pnand %p1306_p7, %p1300_p13 }
  0x60   : > { %1310 = shalt.err (!%p1307_p12)
}
  0x61   : > { %s1311_s23 = scalar_lea.vmem %s1716_s27, 64  ;;  %s1478_s20 = smov [#allocation2]  }
  0x62   : > { %p1312_p0 = scmp.ne.s32.totalorder %s1716_s27, %s1311_s23  ;;  %s1316_s24 = sshll.u32 %s1478_s20, 4  ;;  %s1317_s24 = int_to_ptr.vmem [resolvable:$false] %s1316_s24 }
  0x63   : > { %s1318_s16 = scalar_lea.vmem %s1317_s24, 128  ;;  %p1319_p4 = scmp.lt.s32.totalorder %s1716_s27, %s1317_s24 }
  0x64   : > { %p1314_p1 = pnand %p1312_p0, %p1298_p2  ;;  %p1320_p6 = scmp.lt.s32.totalorder %s1318_s16, %s1311_s23 }
  0x66   : > { %p1315_p9 = pneg %p1314_p1  ;;  %p1321_p10 = por %p1320_p6, %p1319_p4 }
  0x68   : > { %p1322_p3 = pnand %p1321_p10, %p1315_p9 }
  0x6a   : > { %1325 = shalt.err (!%p1322_p3)
}
  0x6b   : > { %1133 = dma.hbm_to_vmem [thread:$0]  (!%p1712_p11), %s1708_s19, 64, %s1716_s27, %s335_s21  }
  0x6c   : > { %355 = sbr.rel (%p1615_p8) target bundleno = 779 (0x30b), region = 44  ;;  %s1746_s22 = sand.u32 (!%p1615_p8), 1, %s1456_s28  }
  0x6d   : > { %s1048_s26 = sshll.u32 (!%p1615_p8), %s1746_s22, 2  ;;  %s358_s17 = scalar_lea.sflag (!%p1615_p8), [#allocation3], %s1746_s22 }
  0x6e   : > { %s361_s23 = scalar_lea.vmem (!%p1615_p8), [#allocation2], %s1048_s26  ;;  %p2070_p4 = scmp.ne.s32.totalorder (!%p1615_p8), %s2060_s13, 0 }
  0x73   : > { %1435 = dma.done.wait (%p2070_p4), %s358_s17, 64  }
  0x74   : > { %1437 = vsyncadd (%p2070_p4), %s358_s17, 4294967232  ;;  %p2071_p9 = scmp.eq.s32.totalorder %s1594_s11, 0 }
  0x76   : > { %1439 = dma.done.wait (%p2071_p9), [#allocation6], 384   ;;  %p2072_p11 = pmov %p2071_p9 }
  0x77   : > { %v1479_v0 = vmov 0.0   ;;  %vm1480_vm0 = vmmov 0   ;;  %v1238_v1 = vld [vmem:[#allocation5] sm:$0xff]   ;;  %v1239_v2 = vld [vmem:[#allocation5 + $0x8] sm:$0xff]   ;;  %v429_v3 = vld [vmem:[%s361_s23] sm:$0xf]  ;;  %v436_v4 = vlaneseq }
  0x78   : > { %1441 = vsyncadd (%p2072_p11), [#allocation6], 4294966912  ;;  %1099 = vmatprep.subr.bf16.mxu0 %v1479_v0  ;;  %1103 = vmatprep.mubr.msk.bf16.mxu0 %vm1480_vm0, %v1479_v0  ;;  %vm452_vm1 = vcmask 261120   ;;  %v434_v6 = vld [vmem:[%s2042_s2] sm:$0x1]  ;;  %s1481_s19 = smov 87  }
  0x79   : > { %1100 = vmatpush3.bf16.msra.mxu0 %v1238_v1  ;;  %v437_v5 = vshrl.u32 %v436_v4, 7  ;;  %v435_v7 = vunpack.c.l.bf16 %v434_v6  ;;  %s1482_s27 = smov 95   ;;  %s1483_s12 = smov 79   ;;  %v1782_v15 = vld [vmem:[%s2043_s3] sm:$0xff]  ;;  %vm506_vm2 = vcmask 56320   ;;  %v1798_v16 = vld [vmem:[#allocation7] sm:$0xff] }
  0x7a   : > { %1101 = vmatprep.subr.bf16.mxu0 %v1479_v0  ;;  %s1484_s21 = smov 103   ;;  %s1485_s20 = smov 127   ;;  %vm514_vm3 = vcmask 7168   ;;  %v1823_v38 = vld [vmem:[%s2045_s5] sm:$0xff]  ;;  %vm522_vm4 = vcmask 60416  }
  0x7b   : > { %v438_v8 = vsub.s32 0, %v437_v5  ;;  %s1486_s24 = smov 71   ;;  %s1487_s16 = smov 111  }
  0x7c   : > { %s1488_s26 = smov 119   ;;  %s1489_s17 = smov 97  }
  0x7d   : > { %1102 = vmatpush3.bf16.msra.mxu0 %v1239_v2  ;;  %v439_v9 = vrot.slane %v435_v7, %v438_v8  ;;  %s1490_s23 = smov 89   ;;  %s1491_s13 = smov 73  }
  0x7e   : > { %s1492_s15 = smov 81   ;;  %p2073_p2 = scmp.ne.s32.totalorder %s2067_s18, 0 }
  0x80   : > { %1104 = vmatmul.mubr.msk.bf16.vlgmr.msra.gmra.mrb[0].mxu0 %vm452_vm1, %v429_v3 }
 0x153   : > { %v490_v10 = vpop.f32.mrb[0].mxu0 }
 0x154   : > { %v1761_v11 = vadd.f32 %v490_v10, %v439_v9  ;;  %v1105_v12 = vpop.f32.mrb[1].mxu0 }
 0x155   : > { %v493_v13 = vpop.f32.mrb[2].mxu0 }
 0x156   : > { %604 = vrot.lane.b32.xlu1 %v1761_v11, %s1481_s19  ;;  %524 = vrot.lane.b32.xlu0 %v1761_v11, %s1482_s27  ;;  %v1106_v14 = vpop.f32.mrb[3].mxu0  ;;  %s1493_s19 = smov 121   ;;  %s1494_s27 = smov 65   ;;  %v1086_v62 = vpack.c.bf16 %v1761_v11, %v1761_v11 }
 0x15a   : > { %675 = vrot.lane.b32.xlu1 %v1761_v11, %s1483_s12  ;;  %527 = vrot.lane.b32.xlu0 %v1761_v11, %s1484_s21  ;;  %s1495_s12 = smov 105   ;;  %s1496_s21 = smov 113  }
 0x15e   : > { %500 = vrot.lane.b32.xlu1 %v1761_v11, %s1485_s20  ;;  %740 = vrot.lane.b32.xlu0 %v1761_v11, %s1486_s24  ;;  %s1505_s20 = smov 1   ;;  %s2055_s24 = smov 64  }
 0x162   : > { %642 = vrot.lane.b32.xlu1 %v1761_v11, %s1487_s16  ;;  %571 = vrot.lane.b32.xlu0 %v1761_v11, %s1488_s26  ;;  %s1497_s16 = smov 40   ;;  %s1498_s26 = smov 32  }
 0x166   : > { %534 = vrot.lane.b32.xlu1 %v1761_v11, %s1489_s17  ;;  %531 = vrot.lane.b32.xlu0 %v1761_v11, %s1490_s23  ;;  %s1499_s17 = smov 56   ;;  %s1500_s23 = smov 48  }
 0x16a   : > { %679 = vrot.lane.b32.xlu1 %v1761_v11, %s1491_s13  ;;  %608 = vrot.lane.b32.xlu0 %v1761_v11, %s1492_s15  ;;  %s1501_s13 = smov 16   ;;  %s1502_s15 = smov 8  }
 0x16e   : > { %508 = vrot.lane.b32.xlu1 %v1761_v11, %s1493_s19  ;;  %744 = vrot.lane.b32.xlu0 %v1761_v11, %s1494_s27  ;;  %s1503_s19 = smov 24   ;;  %s1512_s27 = smov 112  }
 0x172   : > { %646 = vrot.lane.b32.xlu1 %v1761_v11, %s1495_s12  ;;  %575 = vrot.lane.b32.xlu0 %v1761_v11, %s1496_s21  ;;  %s1504_s21 = smov 7   ;;  %s1513_s12 = smov 104  }
 0x176   : > { %612 = vrot.lane.b32.xlu1 %v1782_v15, %s1497_s16  ;;  %539 = vrot.lane.b32.xlu0 %v1782_v15, %s1498_s26 }
 0x17a   : > { %748 = vrot.lane.b32.xlu1 %v1782_v15, %s1499_s17  ;;  %683 = vrot.lane.b32.xlu0 %v1782_v15, %s1500_s23 }
 0x17e   : > { %650 = vrot.lane.b32.xlu1 %v1782_v15, %s1501_s13  ;;  %579 = vrot.lane.b32.xlu0 %v1782_v15, %s1502_s15 }
 0x182   : > { %715 = vrot.lane.b32.xlu0 %v1782_v15, %s1503_s19 }
 0x1c8   : > { %v605_v17 = vpop.permute.xlu1 %604  ;;  %v525_v18 = vpop.permute.xlu0 %524 }
 0x1c9   : > { %v607_v19 = vsel %vm506_vm2, %v605_v17, %v525_v18 }
 0x1ca   : > { %v616_v20 = vmul.f32 %v607_v19, %v1798_v16 }
 0x1cc   : > { %v676_v21 = vpop.permute.xlu1 %675  ;;  %618 = vrot.lane.b32.xlu0 %v616_v20, %s1497_s16  ;;  %v528_v22 = vpop.permute.xlu0 %527 }
 0x1cd   : > { %v530_v23 = vsel %vm506_vm2, %v525_v18, %v528_v22  ;;  %v678_v25 = vsel %vm506_vm2, %v676_v21, %v605_v17 }
 0x1ce   : > { %v543_v24 = vmul.f32 %v530_v23, %v1798_v16  ;;  %v687_v29 = vmul.f32 %v678_v25, %v1798_v16 }
 0x1d0   : > { %v1806_v26 = vpop.permute.xlu1 %500  ;;  %545 = vrot.lane.b32.xlu1 %v543_v24, %s1498_s26  ;;  %v741_v27 = vpop.permute.xlu0 %740 }
 0x1d1   : > { %v743_v28 = vsel %vm506_vm2, %v741_v27, %v676_v21 }
 0x1d2   : > { %v752_v30 = vmul.f32 %v743_v28, %v1798_v16 }
 0x1d4   : > { %v643_v31 = vpop.permute.xlu1 %642  ;;  %689 = vrot.lane.b32.xlu1 %v687_v29, %s1500_s23  ;;  %754 = vrot.lane.b32.xlu0 %v752_v30, %s1499_s17  ;;  %v572_v32 = vpop.permute.xlu0 %571 }
 0x1d5   : > { %v574_v33 = vsel %vm506_vm2, %v572_v32, %v1806_v26  ;;  %v645_v34 = vsel %vm506_vm2, %v643_v31, %v572_v32  ;;  %v713_v37 = vsel %vm506_vm2, %v528_v22, %v643_v31 }
 0x1d6   : > { %v583_v35 = vmul.f32 %v574_v33, %v1798_v16  ;;  %v654_v36 = vmul.f32 %v645_v34, %v1798_v16  ;;  %v719_v42 = vmul.f32 %v713_v37, %v1798_v16 }
 0x1d8   : > { %v535_v39 = vpop.permute.xlu1 %534  ;;  %656 = vrot.lane.b32.xlu0 %v654_v36, %s1501_s13  ;;  %585 = vrot.lane.b32.xlu1 %v583_v35, %s1502_s15  ;;  %v532_v40 = vpop.permute.xlu0 %531 }
 0x1d9   : > { %v537_v41 = vsel %vm514_vm3, %v532_v40, %v535_v39 }
 0x1da   : > { %v549_v43 = vmul.f32 %v537_v41, %v1823_v38 }
 0x1dc   : > { %v680_v44 = vpop.permute.xlu1 %679  ;;  %721 = vrot.lane.b32.xlu1 %v719_v42, %s1503_s19  ;;  %551 = vrot.lane.b32.xlu0 %v549_v43, %s1498_s26  ;;  %v609_v45 = vpop.permute.xlu0 %608  ;;  %s1507_s26 = smov 96  }
 0x1dd   : > { %v611_v46 = vsel %vm514_vm3, %v609_v45, %v532_v40  ;;  %v682_v47 = vsel %vm514_vm3, %v680_v44, %v609_v45 }
 0x1de   : > { %v622_v48 = vmul.f32 %v611_v46, %v1823_v38  ;;  %v693_v49 = vmul.f32 %v682_v47, %v1823_v38 }
 0x1e0   : > { %v1836_v50 = vpop.permute.xlu1 %508  ;;  %695 = vrot.lane.b32.xlu0 %v693_v49, %s1500_s23  ;;  %624 = vrot.lane.b32.xlu1 %v622_v48, %s1497_s16  ;;  %v745_v51 = vpop.permute.xlu0 %744 }
 0x1e1   : > { %v747_v52 = vsel %vm514_vm3, %v745_v51, %v680_v44 }
 0x1e2   : > { %v758_v53 = vmul.f32 %v747_v52, %v1823_v38 }
 0x1e4   : > { %v647_v54 = vpop.permute.xlu1 %646  ;;  %760 = vrot.lane.b32.xlu1 %v758_v53, %s1499_s17  ;;  %v576_v55 = vpop.permute.xlu0 %575 }
 0x1e5   : > { %v578_v56 = vsel %vm514_vm3, %v576_v55, %v1836_v50  ;;  %v649_v57 = vsel %vm514_vm3, %v647_v54, %v576_v55  ;;  %v714_v60 = vsel %vm514_vm3, %v535_v39, %v647_v54 }
 0x1e6   : > { %v589_v58 = vmul.f32 %v578_v56, %v1823_v38  ;;  %v660_v59 = vmul.f32 %v649_v57, %v1823_v38  ;;  %v725_v61 = vmul.f32 %v714_v60, %v1823_v38  ;;  %v516_v56 = vmul.f32 %v1782_v15, %v1761_v11 }
 0x1e8   : > { %662 = vrot.lane.b32.xlu1 %v660_v59, %s1501_s13  ;;  %591 = vrot.lane.b32.xlu0 %v589_v58, %s1502_s15  ;;  %v540_v63 = vpop.permute.xlu0 %539  ;;  %v613_v0 = vpop.permute.xlu1 %612  ;;  %s1510_s13 = smov 72   ;;  %s1869_s15 = sshll.u32 %s1746_s22, 4 }
 0x1e9   : > { %v542_v13 = vmul.f32 %v540_v63, %v1761_v11  ;;  %v615_v19 = vmul.f32 %v613_v0, %v1761_v11 }
 0x1ec   : > { %503 = vrot.lane.b32.xlu1 %v1761_v11, %s1504_s21  ;;  %727 = vrot.lane.b32.xlu0 %v725_v61, %s1503_s19  ;;  %v684_v1 = vpop.permute.xlu0 %683  ;;  %v749_v2 = vpop.permute.xlu1 %748  ;;  %s1511_s19 = smov 120   ;;  %s1887_s21 = scalar_lea.vmem [#allocation8], %s1869_s15 }
 0x1ed   : > { %v686_v20 = vmul.f32 %v684_v1, %v1761_v11  ;;  %v751_v28 = vmul.f32 %v749_v2, %v1761_v11 }
 0x1f0   : > { %511 = vrot.lane.b32.xlu0 %v1761_v11, %s1505_s20  ;;  %567 = vrot.lane.b32.xlu1 %v1086_v62, %s2055_s24  ;;  %v580_v3 = vpop.permute.xlu0 %579  ;;  %v651_v4 = vpop.permute.xlu1 %650  ;;  %s412_s20 = scalar_lea.vmem [#allocation9], %s1869_s15 }
 0x1f1   : > { %v582_v35 = vmul.f32 %v580_v3, %v1761_v11  ;;  %v653_v37 = vmul.f32 %v651_v4, %v1761_v11 }
 0x1f4   : > { %637 = vrot.lane.b32.xlu1 %v1086_v62, %s1499_s17  ;;  %v716_v5 = vpop.permute.xlu0 %715  ;;  %s1508_s17 = smov 88  }
 0x1f5   : > { %v718_v45 = vmul.f32 %v716_v5, %v1761_v11 }
 0x1f8   : > { %708 = vrot.lane.b32.xlu1 %v1086_v62, %s1500_s23  ;;  %s1509_s23 = smov 80  }
 0x23e   : > { %v619_v6 = vpop.permute.xlu0 %618 }
 0x23f   : > { %v621_v22 = vadd.f32 %v619_v6, %v615_v19 }
 0x242   : > { %v546_v7 = vpop.permute.xlu1 %545 }
 0x243   : > { %v548_v14 = vadd.f32 %v546_v7, %v542_v13 }
 0x246   : > { %v690_v8 = vpop.permute.xlu1 %689  ;;  %v755_v9 = vpop.permute.xlu0 %754 }
 0x247   : > { %v692_v23 = vadd.f32 %v690_v8, %v686_v20  ;;  %v757_v31 = vadd.f32 %v755_v9, %v751_v28 }
 0x24a   : > { %v586_v10 = vpop.permute.xlu1 %585  ;;  %v657_v12 = vpop.permute.xlu0 %656 }
 0x24b   : > { %v588_v39 = vadd.f32 %v586_v10, %v582_v35  ;;  %v659_v43 = vadd.f32 %v657_v12, %v653_v37 }
 0x24e   : > { %v722_v17 = vpop.permute.xlu1 %721  ;;  %v552_v18 = vpop.permute.xlu0 %551 }
 0x24f   : > { %v554_v21 = vadd.f32 %v552_v18, %v548_v14  ;;  %v724_v51 = vadd.f32 %v722_v17, %v718_v45 }
 0x251   : > { %v1085_v24 = vpack.c.bf16 %v554_v21, %v554_v21 }
 0x252   : > { %v625_v25 = vpop.permute.xlu1 %624  ;;  %v696_v27 = vpop.permute.xlu0 %695 }
 0x253   : > { %v627_v29 = vadd.f32 %v625_v25, %v621_v22  ;;  %v698_v30 = vadd.f32 %v696_v27, %v692_v23  ;;  %559 = vrot.lane.b32.xlu1 %v1085_v24, %s1507_s26  ;;  %s820_s26 = sshll.u32 %s412_s20, 4  ;;  %s1902_s26 = int_to_ptr.vmem [resolvable:$true] %s820_s26 }
 0x255   : > { %v1088_v32 = vpack.c.bf16 %v627_v29, %v627_v29  ;;  %v1090_v33 = vpack.c.bf16 %v698_v30, %v698_v30 }
 0x256   : > { %v761_v34 = vpop.permute.xlu1 %760 }
 0x257   : > { %v763_v36 = vadd.f32 %v761_v34, %v757_v31  ;;  %632 = vrot.lane.b32.xlu0 %v1088_v32, %s1508_s17  ;;  %703 = vrot.lane.b32.xlu1 %v1090_v33, %s1509_s23  ;;  %s783_s17 = sand.u32 1, %s1594_s11   ;;  %s1897_s23 = sshll.u32 %s1464_s30, 8 }
 0x258   : > { %s1908_s11 = scalar_lea.hbm %s2047_s7, %s1897_s23  ;;  %s1921_s24 = scalar_lea.sflag [#allocation10], %s783_s17 }
 0x259   : > { %v1092_v40 = vpack.c.bf16 %v763_v36, %v763_v36 }
 0x25a   : > { %v663_v41 = vpop.permute.xlu1 %662  ;;  %v592_v42 = vpop.permute.xlu0 %591 }
 0x25b   : > { %v594_v44 = vadd.f32 %v592_v42, %v588_v39  ;;  %768 = vrot.lane.b32.xlu0 %v1092_v40, %s1510_s13  ;;  %773 = vrot.lane.b32.xlu1 %v1086_v62, %s1497_s16  ;;  %v665_v46 = vadd.f32 %v663_v41, %v659_v43  ;;  %s1879_s16 = scalar_lea.vmem [#allocation11], %s1869_s15  ;;  %s1326_s15 = scalar_lea.vmem %s1902_s26, 256 }
 0x25c   : > { %s837_s13 = sshll.u32 %s1879_s16, 4  ;;  %p1327_p8 = scmp.ne.s32.totalorder %s1902_s26, %s1326_s15  ;;  %s1910_s13 = int_to_ptr.vmem [resolvable:$true] %s837_s13 }
 0x25d   : > { %v1087_v47 = vpack.c.bf16 %v594_v44, %v594_v44  ;;  %v1089_v54 = vpack.c.bf16 %v665_v46, %v665_v46 }
 0x25e   : > { %v504_v48 = vpop.permute.xlu1 %503  ;;  %v728_v49 = vpop.permute.xlu0 %727  ;;  %p1328_p13 = pnand %p1327_p8, %p2073_p2 }
 0x25f   : > { %v507_v52 = vsel %vm506_vm2, %v1806_v26, %v504_v48  ;;  %599 = vrot.lane.b32.xlu0 %v1087_v47, %s1511_s19  ;;  %v730_v55 = vadd.f32 %v728_v49, %v724_v51  ;;  %s1514_s19 = smov [#allocation9]  }
 0x260   : > { %v517_v53 = vmul.f32 %v507_v52, %v1798_v16  ;;  %p1329_p5 = pneg %p1328_p13  ;;  %s1330_s0 = sshll.u32 %s1514_s19, 4  ;;  %s1331_s0 = int_to_ptr.vmem [resolvable:$false] %s1330_s0 }
 0x261   : > { %v1091_v11 = vpack.c.bf16 %v730_v55, %v730_v55  ;;  %s1332_s1 = scalar_lea.vmem %s1331_s0, 512  ;;  %p1333_p7 = scmp.lt.s32.totalorder %s1902_s26, %s1331_s0 }
 0x262   : > { %v512_v57 = vpop.permute.xlu0 %511  ;;  %v568_v58 = vpop.permute.xlu1 %567  ;;  %v518_v16 = vadd.f32 %v517_v53, %v516_v56  ;;  %p1334_p12 = scmp.lt.s32.totalorder %s1332_s1, %s1326_s15 }
 0x263   : > { %v515_v59 = vsel %vm514_vm3, %v1836_v50, %v512_v57  ;;  %570 = vst.msk [vmem:[%s1879_s16] sm:$0xf] %vm522_vm4, %v568_v58  ;;  %670 = vrot.lane.b32.xlu0 %v1089_v54, %s1512_s27 }
 0x264   : > { %v519_v26 = vmul.f32 %v515_v59, %v1823_v38  ;;  %p1335_p0 = por %p1334_p12, %p1333_p7 }
 0x266   : > { %v520_v15 = vadd.f32 %v519_v26, %v518_v16  ;;  %v638_v60 = vpop.permute.xlu1 %637  ;;  %p1336_p1 = pnand %p1335_p0, %p1329_p5 }
 0x267   : > { %1063 = vst.msk [vmem:[%s1879_s16 + $0x4] sm:$0xf] %vm522_vm4, %v638_v60  ;;  %735 = vrot.lane.b32.xlu0 %v1091_v11, %s1513_s12  ;;  %s1916_s12 = scalar_lea.hbm %s2048_s8, %s1897_s23 }
 0x268   : > { %v521_v50 = vpack.c.bf16 %v520_v15, %v520_v15 }
 0x26a   : > { %v709_v61 = vpop.permute.xlu1 %708  ;;  %523 = vst.msk [vmem:[%s1887_s21] sm:$0xf] %vm522_vm4, %v521_v50 }
 0x26b   : > { %1068 = vst.msk [vmem:[%s1879_s16 + $0x8] sm:$0xf] %vm522_vm4, %v709_v61 }
 0x2c5   : > { %v560_v38 = vpop.permute.xlu1 %559 }
 0x2c6   : > { %562 = vst.msk [vmem:[%s412_s20] sm:$0xf] %vm522_vm4, %v560_v38 }
 0x2c9   : > { %v633_v62 = vpop.permute.xlu0 %632  ;;  %v704_v63 = vpop.permute.xlu1 %703 }
 0x2ca   : > { %1062 = vst.msk [vmem:[%s412_s20 + $0x4] sm:$0xf] %vm522_vm4, %v633_v62  ;;  %1067 = vst.msk [vmem:[%s412_s20 + $0x8] sm:$0xf] %vm522_vm4, %v704_v63 }
 0x2cd   : > { %v769_v0 = vpop.permute.xlu0 %768  ;;  %v774_v1 = vpop.permute.xlu1 %773 }
 0x2ce   : > { %1072 = vst.msk [vmem:[%s412_s20 + $0xc] sm:$0xf] %vm522_vm4, %v769_v0  ;;  %1073 = vst.msk [vmem:[%s1879_s16 + $0xc] sm:$0xf] %vm522_vm4, %v774_v1 }
 0x2cf   : > { %1339 = shalt.err (!%p1336_p1)
}
 0x2d0   : > { %s1340_s16 = scalar_lea.hbm %s1908_s11, 256  ;;  %s1344_s30 = scalar_lea.hbm %s2047_s7, 512 }
 0x2d1   : > { %p1341_p6 = scmp.ne.s32.totalorder %s1908_s11, %s1340_s16  ;;  %p1345_p4 = scmp.lt.u32.totalorder %s1908_s11, %s2047_s7 }
 0x2d2   : > { %p1346_p9 = scmp.lt.u32.totalorder %s1344_s30, %s1340_s16  ;;  %p1348_p8 = scmp.lt.u32.totalorder %s1340_s16, %s1908_s11 }
 0x2d3   : > { %p1342_p10 = pnand %p1341_p6, %p2073_p2 }
 0x2d4   : > { %p1347_p11 = por %p1346_p9, %p1345_p4 }
 0x2d5   : > { %p1343_p3 = pneg %p1342_p10 }
 0x2d6   : > { %p1349_p13 = por %p1348_p8, %p1347_p11 }
 0x2d8   : > { %p1350_p5 = pnand %p1349_p13, %p1343_p3 }
 0x2da   : > { %1353 = shalt.err (!%p1350_p5)
}
 0x2db   : > { %s1515_s1 = smov 4   ;;  %s2074_s15 = smov 64  }
 0x2dc   : > { %1118 = dma.vmem_to_hbm [thread:$0]  (%p2073_p2), %s1902_s26, 256, %s1908_s11, %s1921_s24, %s2074_s15, %s2074_s15, %s1515_s1  }
 0x2dd   : > { %s1354_s19 = scalar_lea.vmem %s1910_s13, 256  ;;  %s1516_s16 = smov [#allocation11]  }
 0x2de   : > { %p1355_p7 = scmp.ne.s32.totalorder %s1910_s13, %s1354_s19  ;;  %s1358_s20 = sshll.u32 %s1516_s16, 4  ;;  %s1359_s20 = int_to_ptr.vmem [resolvable:$false] %s1358_s20 }
 0x2df   : > { %s1360_s17 = scalar_lea.vmem %s1359_s20, 512  ;;  %p1361_p1 = scmp.lt.s32.totalorder %s1910_s13, %s1359_s20 }
 0x2e0   : > { %p1356_p12 = pnand %p1355_p7, %p2073_p2  ;;  %p1362_p6 = scmp.lt.s32.totalorder %s1360_s17, %s1354_s19 }
 0x2e2   : > { %p1357_p0 = pneg %p1356_p12  ;;  %p1363_p10 = por %p1362_p6, %p1361_p1 }
 0x2e4   : > { %p1364_p3 = pnand %p1363_p10, %p1357_p0 }
 0x2e6   : > { %1367 = shalt.err (!%p1364_p3)
}
 0x2e7   : > { %s1368_s26 = scalar_lea.hbm %s1916_s12, 256  ;;  %s1372_s27 = scalar_lea.hbm %s2048_s8, 512 }
 0x2e8   : > { %p1369_p4 = scmp.ne.s32.totalorder %s1916_s12, %s1368_s26  ;;  %p1373_p8 = scmp.lt.u32.totalorder %s1916_s12, %s2048_s8 }
 0x2e9   : > { %p1374_p13 = scmp.lt.u32.totalorder %s1372_s27, %s1368_s26  ;;  %p1376_p7 = scmp.lt.u32.totalorder %s1368_s26, %s1916_s12 }
 0x2ea   : > { %p1370_p9 = pnand %p1369_p4, %p2073_p2 }
 0x2eb   : > { %p1375_p5 = por %p1374_p13, %p1373_p8 }
 0x2ec   : > { %p1371_p11 = pneg %p1370_p9 }
 0x2ed   : > { %p1377_p12 = por %p1376_p7, %p1375_p5 }
 0x2ef   : > { %p1378_p0 = pnand %p1377_p12, %p1371_p11 }
 0x2f1   : > { %1381 = shalt.err (!%p1378_p0)
}
 0x2f2   : > { %1119 = dma.vmem_to_hbm [thread:$0]  (%p2073_p2), %s1910_s13, 256, %s1916_s12, %s1921_s24, %s2074_s15, %s2074_s15, %s1515_s1   ;;  %v600_v2 = vpop.permute.xlu0 %599 }
 0x2f3   : > { %1060 = vst.msk [vmem:[%s1887_s21 + $0x4] sm:$0xf] %vm522_vm4, %v600_v2  ;;  %s803_s19 = sshll.u32 %s1887_s21, 4  ;;  %s1984_s26 = scalar_lea.hbm %s2046_s6, %s1897_s23  ;;  %s1978_s19 = int_to_ptr.vmem [resolvable:$true] %s803_s19 }
 0x2f4   : > { %s779_s24 = scalar_lea.sflag [#allocation4], %s1746_s22  ;;  %s1382_s13 = scalar_lea.vmem %s1978_s19, 256 }
 0x2f5   : > { %p1383_p1 = scmp.ne.s32.totalorder %s1978_s19, %s1382_s13  ;;  %s1517_s12 = smov [#allocation8]  }
 0x2f6   : > { %v671_v3 = vpop.permute.xlu0 %670  ;;  %s1386_s11 = sshll.u32 %s1517_s12, 4  ;;  %s1387_s11 = int_to_ptr.vmem [resolvable:$false] %s1386_s11 }
 0x2f7   : > { %1065 = vst.msk [vmem:[%s1887_s21 + $0x8] sm:$0xf] %vm522_vm4, %v671_v3  ;;  %p1384_p6 = pnand %p1383_p1, %p2073_p2  ;;  %s1388_s30 = scalar_lea.vmem %s1387_s11, 512 }
 0x2f8   : > { %p1389_p3 = scmp.lt.s32.totalorder %s1978_s19, %s1387_s11  ;;  %p1390_p4 = scmp.lt.s32.totalorder %s1388_s30, %s1382_s13 }
 0x2f9   : > { %p1385_p10 = pneg %p1384_p6 }
 0x2fa   : > { %v736_v4 = vpop.permute.xlu0 %735  ;;  %p1391_p9 = por %p1390_p4, %p1389_p3 }
 0x2fb   : > { %1070 = vst.msk [vmem:[%s1887_s21 + $0xc] sm:$0xf] %vm522_vm4, %v736_v4 }
 0x2fc   : > { %p1392_p11 = pnand %p1391_p9, %p1385_p10 }
 0x2fe   : > { %1395 = shalt.err (!%p1392_p11)
}
 0x2ff   : > { %s1396_s21 = scalar_lea.hbm %s1984_s26, 256  ;;  %s1400_s0 = scalar_lea.hbm %s2046_s6, 512 }
 0x300   : > { %p1397_p8 = scmp.ne.s32.totalorder %s1984_s26, %s1396_s21  ;;  %p1401_p7 = scmp.lt.u32.totalorder %s1984_s26, %s2046_s6 }
 0x301   : > { %p1402_p12 = scmp.lt.u32.totalorder %s1400_s0, %s1396_s21  ;;  %p1404_p1 = scmp.lt.u32.totalorder %s1396_s21, %s1984_s26 }
 0x302   : > { %p1398_p13 = pnand %p1397_p8, %p2073_p2 }
 0x303   : > { %p1403_p0 = por %p1402_p12, %p1401_p7 }
 0x304   : > { %p1399_p5 = pneg %p1398_p13 }
 0x305   : > { %p1405_p6 = por %p1404_p1, %p1403_p0 }
 0x307   : > { %p1406_p10 = pnand %p1405_p6, %p1399_p5 }
 0x309   : > { %1409 = shalt.err (!%p1406_p10)
}
 0x30a   : > { %1117 = dma.vmem_to_hbm [thread:$0]  (%p2073_p2), %s1978_s19, 256, %s1984_s26, %s779_s24, %s2074_s15, %s2074_s15, %s1515_s1  }
 0x30b PF: > { %s2075_s17 = sld [smem:[#allocation16_spill]]  ;;  %s2076_s13 = sld [smem:[#allocation17_spill]] }
 0x30c   : > { %p2078_p4 = scmp.ge.s32.totalorder %s1472_s10, 2 }
 0x311   : > { %s852_s12 = sand.u32 1, %s2075_s17   ;;  %p2077_p3 = scmp.ne.s32.totalorder %s2076_s13, 0 }
 0x312   : > { %s853_s11 = scalar_lea.sflag [#allocation4], %s852_s12 }
 0x313   : > { %p1135_p9 = pnand %p2078_p4, %p2077_p3 }
 0x315   : > { %1443 = dma.done.wait (!%p1135_p9), %s853_s11, 256  }
 0x316   : > { %1445 = vsyncadd (!%p1135_p9), %s853_s11, 4294967040  ;;  %s2079_s18 = sadd.s32 4294967294, %s1472_s10  }
 0x317   : > { %s861_s30 = sand.u32 1, %s2079_s18  }
 0x318   : > { %s862_s21 = scalar_lea.sflag [#allocation10], %s861_s30 }
 0x319   : > { %1447 = dma.done.wait (!%p1135_p9), %s862_s21, 512  }
 0x31a   : > { %1449 = vsyncadd (!%p1135_p9), %s862_s21, 4294966784  ;;  %s29_s10 = sadd.s32 1, %s1472_s10   ;;  %s2080_s27 = smov %s1456_s28 }
 0x31b   : > { %p26_p2 = scmp.ge.s32.totalorder %s29_s10, 4   ;;  %s2081_s28 = smov %s1460_s29 }
 0x31c   : > { %s2082_s29 = smov %s1703_s25  ;;  %s2083_s30 = smov %s1468_s9 }
 0x31d   : > { %s2084_s9 = smov %s2086_s14  ;;  %28 = sbr.rel (!%p26_p2) target bundleno = 12 (0xc), region = 145 }
 0x324   :  { %876 = vsyncpa [#allocation3], 1 }
 0x325   :  { %878 = vsyncpa [#allocation3 + $0x1], 1 }
 0x326   :  { %879 = vsyncpa [#allocation6], 1 }
 0x327   :  { %880 = vsyncpa [#allocation4], 1 }
 0x328   :  { %882 = vsyncpa [#allocation4 + $0x1], 1 }
 0x329   :  { %883 = vsyncpa [#allocation10], 1 }
 0x32a   :  { %885 = vsyncpa [#allocation10 + $0x1], 1 }

</bundles_post_ra>
